<compile_context>
chip_gen: v7x
topology: tpu7x:2x2x1
jax: 0.10.0
libtpu: 0.0.40
codegen_flags: <defaults>
</compile_context>

<pallas_src>
import functools

import jax
import jax.numpy as jnp
from jax import lax
from jax.experimental import pallas as pl
from jax.experimental.pallas import tpu as pltpu


def _round_up(x, m):
    return (x + m - 1) // m * m


def _sublane_multiple(dtype):
    # Rows per packed sublane group: f32 -> 8, bf16 -> 16, int8/fp8 -> 32.
    return max(8, 32 // jnp.dtype(dtype).itemsize)


def _lookup_kernel(uid_ids_ref, iid_ids_ref, uid_tab_ref, iid_tab_ref, out_ref,
                   *, u_size, i_size):
    """Vectorized per-tile gather via one-hot MXU matmuls.

    uid_ids_ref / iid_ids_ref: (tb, 1) int32 VMEM id blocks for this batch tile.
    uid_tab_ref / iid_tab_ref: full padded tables resident in VMEM (constant
      index_map => DMA'd once, not per grid step).
    out_ref: (tb, 2*D_pad) lane-dense slab; lanes [0, D) hold the uid row,
      lanes [D, 2D) hold the iid row (both stores are unmasked, 128-aligned).
    """
    tab_dtype = uid_tab_ref.dtype
    u_rows = uid_tab_ref.shape[0]
    i_rows = iid_tab_ref.shape[0]
    tb = out_ref.shape[0]
    d_pad = out_ref.shape[1] // 2

    # Clamp in-kernel: VMEM OOB reads are not runtime-checked, and the padded
    # (zero) table rows must stay unreachable.
    uid = jnp.clip(uid_ids_ref[...], 0, u_size - 1)        # (tb, 1) int32
    iid = jnp.clip(iid_ids_ref[...], 0, i_size - 1)        # (tb, 1) int32

    # One-hot gather in the table dtype (never int: v7x MXU has no int path).
    u_iota = lax.broadcasted_iota(jnp.int32, (tb, u_rows), 1)
    i_iota = lax.broadcasted_iota(jnp.int32, (tb, i_rows), 1)
    u_onehot = (u_iota == uid).astype(tab_dtype)            # (tb, U_pad)
    i_onehot = (i_iota == iid).astype(tab_dtype)            # (tb, I_pad)

    uid_rows = jnp.dot(u_onehot, uid_tab_ref[...],
                       preferred_element_type=jnp.float32)  # (tb, D_pad)
    iid_rows = jnp.dot(i_onehot, iid_tab_ref[...],
                       preferred_element_type=jnp.float32)  # (tb, D_pad)

    # Two full-width unmasked stores (static offsets, multiples of 128 lanes).
    out_ref[:, pl.ds(0, d_pad)] = uid_rows.astype(out_ref.dtype)
    out_ref[:, pl.ds(d_pad, d_pad)] = iid_rows.astype(out_ref.dtype)


def pad_tables(uid_table, iid_table):
    """Pad tables to sublane/lane-aligned shapes ONCE at model init.

    Returns (uid_table_padded, iid_table_padded, (U, I, D))."""
    assert uid_table.dtype == iid_table.dtype, "embedding tables must share a dtype"
    U, D = uid_table.shape
    I, D2 = iid_table.shape
    assert D2 == D
    sub = _sublane_multiple(uid_table.dtype)
    U_pad, I_pad, D_pad = _round_up(U, sub), _round_up(I, sub), _round_up(D, 128)
    if (U_pad, D_pad) != (U, D):
        uid_table = jnp.pad(uid_table, ((0, U_pad - U), (0, D_pad - D)))
    if (I_pad, D_pad) != (I, D):
        iid_table = jnp.pad(iid_table, ((0, I_pad - I), (0, D_pad - D)))
    return uid_table, iid_table, (U, I, D)


def lookup_embedding(x, uid_tab_p, iid_tab_p, sizes, *, tile_b=512):
    """x: (B, 2) int; uid_tab_p/iid_tab_p: pre-padded tables -> (B, 2, D)."""
    U, I, D = sizes
    U_pad, D_pad = uid_tab_p.shape
    I_pad, D_pad2 = iid_tab_p.shape
    assert D_pad2 == D_pad
    B = x.shape[0]
    itemsize = jnp.dtype(uid_tab_p.dtype).itemsize

    # Residency guard: tables (double-buffered by Pallas) must fit VMEM.
    table_bytes = 2 * (U_pad + I_pad) * D_pad * itemsize
    assert table_bytes < 24 * 1024 * 1024, (
        "embedding tables too large for the VMEM-resident path; use the "
        "manual-DMA HBM path (see TODO at top of file)")

    uid_ids = x[:, 0:1].astype(jnp.int32)   # (B, 1)
    iid_ids = x[:, 1:2].astype(jnp.int32)   # (B, 1)

    # Batch tile: multiple of 8 sublanes; capped so the grid has >= 2 steps
    # whenever possible (lets the "parallel" axis shard across v7x's 2 TCs).
    B_pad0 = _round_up(max(B, 8), 8)
    tb_cap = _round_up(pl.cdiv(B_pad0, 2), 8)
    tb = max(8, min(_round_up(tile_b, 8), tb_cap))
    B_pad = _round_up(B, tb)
    if B_pad != B:
        uid_ids = jnp.pad(uid_ids, ((0, B_pad - B), (0, 0)))
        iid_ids = jnp.pad(iid_ids, ((0, B_pad - B), (0, 0)))

    kernel = functools.partial(_lookup_kernel, u_size=U, i_size=I)

    cost = pl.CostEstimate(
        flops=2 * B_pad * (U_pad + I_pad) * D_pad,          # one-hot matmuls
        transcendentals=0,
        bytes_accessed=(U_pad + I_pad) * D_pad * itemsize    # tables in (once)
        + 2 * B_pad * 4                                       # ids in
        + B_pad * 2 * D_pad * itemsize,                       # slab out
    )

    out_flat = pl.pallas_call(
        kernel,
        out_shape=jax.ShapeDtypeStruct((B_pad, 2 * D_pad), uid_tab_p.dtype),
        grid_spec=pltpu.PrefetchScalarGridSpec(
            num_scalar_prefetch=0,
            grid=(B_pad // tb,),
            in_specs=[
                pl.BlockSpec((tb, 1), lambda b: (b, 0)),          # uid ids
                pl.BlockSpec((tb, 1), lambda b: (b, 0)),          # iid ids
                pl.BlockSpec((U_pad, D_pad), lambda b: (0, 0)),   # uid table (resident)
                pl.BlockSpec((I_pad, D_pad), lambda b: (0, 0)),   # iid table (resident)
            ],
            out_specs=pl.BlockSpec((tb, 2 * D_pad), lambda b: (b, 0)),
        ),
        compiler_params=pltpu.CompilerParams(
            dimension_semantics=("parallel",),
        ),
        cost_estimate=cost,
    )(uid_ids, iid_ids, uid_tab_p, iid_tab_p)

    # Free wrapper-side reshape: lanes [0,D) = uid row, [D,2D) = iid row.
    out = out_flat.reshape(B_pad, 2, D_pad)
    return out[:B, :, :D]


def gmf_base_forward(x, uid_tab_p, iid_tab_p, sizes, linear_w, *, tile_b=512):
    """GMFBase.forward (stages 'train_src'/'train_tgt'/'test_tgt'/...):
    Pallas embedding lookup + hadamard + bias-free 1-unit linear head (XLA)."""
    emb = lookup_embedding(x, uid_tab_p, iid_tab_p, sizes, tile_b=tile_b)
    h = emb[:, 0, :] * emb[:, 1, :]
    return h @ linear_w                      # (B,)


def lookup_embedding_ref(x, uid_table, iid_table):
    uid_emb = uid_table[x[:, 0]][:, None, :]
    iid_emb = iid_table[x[:, 1]][:, None, :]
    return jnp.concatenate([uid_emb, iid_emb], axis=1)


if __name__ == "__main__":
    # Small deterministic setup consistent with the module's __init__:
    #   uid_embedding: (uid_all, emb_dim), iid_embedding: (iid_all + 1, emb_dim)
    uid_all, iid_all, emb_dim = 16, 24, 128

    key = jax.random.PRNGKey(0)
    k_u, k_i, k_w, k_xu, k_xi = jax.random.split(key, 5)

    # torch.nn.Embedding default init ~ N(0, 1)
    uid_table = jax.random.normal(k_u, (uid_all, emb_dim), dtype=jnp.float32)
    iid_table = jax.random.normal(k_i, (iid_all + 1, emb_dim), dtype=jnp.float32)
    linear_w = jax.random.normal(k_w, (emb_dim,), dtype=jnp.float32) / jnp.sqrt(emb_dim)

    # Pad tables once (model init), not per forward call.
    uid_p, iid_p, sizes = pad_tables(uid_table, iid_table)

    # Case 1: small batch, not a multiple of 8 (exercises batch padding + 2-step grid).
    batch = 10
    uid_idx = jax.random.randint(k_xu, (batch,), 0, uid_all, dtype=jnp.int32)
    iid_idx = jax.random.randint(k_xi, (batch,), 0, iid_all + 1, dtype=jnp.int32)
    x = jnp.stack([uid_idx, iid_idx], axis=1)  # (B, 2) int32

    out = jax.block_until_ready(lookup_embedding(x, uid_p, iid_p, sizes))
    ref = lookup_embedding_ref(x, uid_table, iid_table)
    assert out.shape == (batch, 2, emb_dim)
    assert out.dtype == jnp.float32
    assert jnp.allclose(out, ref), "Pallas output mismatch vs reference (case 1)"

    # GMFBase head on top of the kernel (stage 'train_src').
    y = jax.block_until_ready(gmf_base_forward(x, uid_p, iid_p, sizes, linear_w))
    y_ref = (ref[:, 0, :] * ref[:, 1, :]) @ linear_w
    assert y.shape == (batch,)
    assert jnp.allclose(y, y_ref, atol=1e-5, rtol=1e-5), "GMFBase head mismatch"

    # Case 2: larger batch -> multi-tile grid (tb=512 -> 3 grid steps) + padding.
    batch2 = 1030
    k_xu2, k_xi2 = jax.random.split(jax.random.PRNGKey(1))
    uid_idx2 = jax.random.randint(k_xu2, (batch2,), 0, uid_all, dtype=jnp.int32)
    iid_idx2 = jax.random.randint(k_xi2, (batch2,), 0, iid_all + 1, dtype=jnp.int32)
    x2 = jnp.stack([uid_idx2, iid_idx2], axis=1)

    out2 = jax.block_until_ready(lookup_embedding(x2, uid_p, iid_p, sizes, tile_b=512))
    ref2 = lookup_embedding_ref(x2, uid_table, iid_table)
    assert out2.shape == (batch2, 2, emb_dim)
    assert jnp.allclose(out2, ref2), "Pallas output mismatch vs reference (case 2)"

    print("KERNEL_OK")
</pallas_src>

<mosaic_0001>
module attributes {stable_mosaic.version = 11 : i64} {
  func.func @_lookup_kernel(%arg0: i32, %arg1: memref<8x1xi32, #tpu.memory_space<vmem>>, %arg2: memref<8x1xi32, #tpu.memory_space<vmem>>, %arg3: memref<16x128xf32, #tpu.memory_space<vmem>>, %arg4: memref<32x128xf32, #tpu.memory_space<vmem>>, %arg5: memref<8x256xf32, #tpu.memory_space<vmem>>) attributes {dimension_semantics = [#tpu.dimension_semantics<parallel>], iteration_bounds = array<i64: 2>, scalar_prefetch = 0 : i64, scratch_operands = 0 : i64, tpu.core_type = #tpu.core_type<tc>, window_params = [{transform_indices = @transform_0, window_bounds = array<i64: 8, 1>}, {transform_indices = @transform_1, window_bounds = array<i64: 8, 1>}, {pipeline_mode = #tpu.pipeline_mode<synchronous>, transform_indices = @transform_2, window_bounds = array<i64: 16, 128>}, {pipeline_mode = #tpu.pipeline_mode<synchronous>, transform_indices = @transform_3, window_bounds = array<i64: 32, 128>}, {transform_indices = @transform_4, window_bounds = array<i64: 8, 256>}]} {
    %c0 = arith.constant 0 : index
    %c0_0 = arith.constant 0 : index
    %0 = vector.load %arg1[%c0, %c0_0] : memref<8x1xi32, #tpu.memory_space<vmem>>, vector<8x1xi32>
    %c0_i32 = arith.constant 0 : i32
    %c15_i32 = arith.constant 15 : i32
    %1 = vector.broadcast %c0_i32 : i32 to vector<8x1xi32>
    %2 = arith.maxsi %1, %0 : vector<8x1xi32>
    %3 = vector.broadcast %c15_i32 : i32 to vector<8x1xi32>
    %4 = arith.minsi %3, %2 : vector<8x1xi32>
    %c0_1 = arith.constant 0 : index
    %c0_2 = arith.constant 0 : index
    %5 = vector.load %arg2[%c0_1, %c0_2] : memref<8x1xi32, #tpu.memory_space<vmem>>, vector<8x1xi32>
    %c0_i32_3 = arith.constant 0 : i32
    %c24_i32 = arith.constant 24 : i32
    %6 = vector.broadcast %c0_i32_3 : i32 to vector<8x1xi32>
    %7 = arith.maxsi %6, %5 : vector<8x1xi32>
    %8 = vector.broadcast %c24_i32 : i32 to vector<8x1xi32>
    %9 = arith.minsi %8, %7 : vector<8x1xi32>
    %10 = tpu.iota {dimensions = array<i32: 1>} : vector<8x16xi32>
    %11 = tpu.iota {dimensions = array<i32: 1>} : vector<8x32xi32>
    %12 = vector.broadcast %4 : vector<8x1xi32> to vector<8x16xi32>
    %13 = arith.cmpi eq, %10, %12 : vector<8x16xi32>
    %14 = arith.extui %13 : vector<8x16xi1> to vector<8x16xi32>
    %15 = arith.sitofp %14 : vector<8x16xi32> to vector<8x16xf32>
    %16 = vector.broadcast %9 : vector<8x1xi32> to vector<8x32xi32>
    %17 = arith.cmpi eq, %11, %16 : vector<8x32xi32>
    %18 = arith.extui %17 : vector<8x32xi1> to vector<8x32xi32>
    %19 = arith.sitofp %18 : vector<8x32xi32> to vector<8x32xf32>
    %c0_4 = arith.constant 0 : index
    %c0_5 = arith.constant 0 : index
    %20 = vector.load %arg3[%c0_4, %c0_5] : memref<16x128xf32, #tpu.memory_space<vmem>>, vector<16x128xf32>
    %cst = arith.constant dense<0.000000e+00> : vector<8x128xf32>
    %21 = tpu.matmul %15, %20, %cst {dimension_numbers = #tpu.dot_dimension_numbers<[1], [0], [0], [1], [0, 0, 1, 1], [], []>} : vector<8x16xf32>, vector<16x128xf32>, vector<8x128xf32> -> vector<8x128xf32>
    %c0_6 = arith.constant 0 : index
    %c0_7 = arith.constant 0 : index
    %22 = vector.load %arg4[%c0_6, %c0_7] : memref<32x128xf32, #tpu.memory_space<vmem>>, vector<32x128xf32>
    %cst_8 = arith.constant dense<0.000000e+00> : vector<8x128xf32>
    %23 = tpu.matmul %19, %22, %cst_8 {dimension_numbers = #tpu.dot_dimension_numbers<[1], [0], [0], [1], [0, 0, 1, 1], [], []>} : vector<8x32xf32>, vector<32x128xf32>, vector<8x128xf32> -> vector<8x128xf32>
    %c0_9 = arith.constant 0 : index
    %c0_10 = arith.constant 0 : index
    %24 = vector.load %arg5[%c0_9, %c0_10] : memref<8x256xf32, #tpu.memory_space<vmem>>, vector<8x128xf32>
    tpu.vector_store %arg5[%c0_9, %c0_10], %21 {strides = array<i32>} : memref<8x256xf32, #tpu.memory_space<vmem>>, vector<8x128xf32>,
    %c0_11 = arith.constant 0 : index
    %c128 = arith.constant 128 : index
    %25 = vector.load %arg5[%c0_11, %c128] : memref<8x256xf32, #tpu.memory_space<vmem>>, vector<8x128xf32>
    tpu.vector_store %arg5[%c0_11, %c128], %23 {strides = array<i32>} : memref<8x256xf32, #tpu.memory_space<vmem>>, vector<8x128xf32>,
    return
  }
  func.func @transform_0(%arg0: i32) -> (i32, i32) {
    %c0_i32 = arith.constant 0 : i32
    %c0_i32_0 = arith.constant 0 : i32
    return %arg0, %c0_i32 : i32, i32
  }
  func.func @transform_1(%arg0: i32) -> (i32, i32) {
    %c0_i32 = arith.constant 0 : i32
    %c0_i32_0 = arith.constant 0 : i32
    return %arg0, %c0_i32 : i32, i32
  }
  func.func @transform_2(%arg0: i32) -> (i32, i32) {
    %c0_i32 = arith.constant 0 : i32
    %c0_i32_0 = arith.constant 0 : i32
    %c0_i32_1 = arith.constant 0 : i32
    return %c0_i32, %c0_i32_0 : i32, i32
  }
  func.func @transform_3(%arg0: i32) -> (i32, i32) {
    %c0_i32 = arith.constant 0 : i32
    %c0_i32_0 = arith.constant 0 : i32
    %c0_i32_1 = arith.constant 0 : i32
    return %c0_i32, %c0_i32_0 : i32, i32
  }
  func.func @transform_4(%arg0: i32) -> (i32, i32) {
    %c0_i32 = arith.constant 0 : i32
    %c0_i32_0 = arith.constant 0 : i32
    return %arg0, %c0_i32 : i32, i32
  }
}

</mosaic_0001>

<bundles_post_ra>
// kernel: tpu_custom_call.1
= control target key start
LH: loop header
LB: loop body
LE: loop exit
PB: predicated region body
PF: predicated region fallthrough
CT: control target
= control target key end

     0   :  { %9 = vsyncpa [#allocation3], 0  ;;  %s893_s0 = inlined_call_operand.vmem [shape: s32[16,1], index: 0, kind: input, shape index: {}]   ;;  %s894_s1 = inlined_call_operand.vmem [shape: s32[16,1], index: 1, kind: input, shape index: {}]   ;;  %s895_s2 = inlined_call_operand.hbm [shape: f32[16,128], index: 2, kind: input, shape index: {}]   ;;  %s896_s3 = inlined_call_operand.vmem [shape: f32[32,128], index: 3, kind: input, shape index: {}]   ;;  %s897_s4 = inlined_call_operand.hbm [shape: f32[16,256], index: 4, kind: output, shape index: {}]  }
   0x1   :  { %10 = vsyncpa [#allocation4], 0 }
   0x2   :  { %12 = vsyncpa [#allocation4 + $0x1], 0  ;;  %s743_s15 = smov 0   ;;  %s745_s16 = smov 0  }
   0x3   :  { %s747_s17 = smov 0   ;;  %s749_s18 = smov 0  }
   0x4 LB: > { %s764_s19 = sadd.s32 4294967295, %s708_s18   ;;  %s503_s20 = sadd.s32 4294967294, %s708_s18   ;;  %s708_s18 = sphi %s749_s18, %s913_s18   ;;  %s704_s17 = sphi %s747_s17, %s912_s17   ;;  %s700_s16 = sphi %s745_s16, %s911_s16   ;;  %s696_s15 = sphi %s743_s15, %s910_s15  }
   0x5   : > { %s768_s21 = sadd.s32 1, %s708_s18   ;;  %s119_s22 = sadd.s32 1, %s704_s17 }
   0x6   : > { %s116_s23 = ssub.s32 %s708_s18, %s768_s21  ;;  %p129_p0 = scmp.ne.s32.totalorder %s704_s17, %s700_s16 }
   0x7   : > { %p117_p1 = scmp.eq.s32.totalorder %s116_s23, 0  ;;  %p130_p2 = scmp.eq.s32.totalorder %s764_s19, 1 }
   0x8   : > { %p135_p3 = scmp.ne.s32.totalorder %s700_s16, %s696_s15  ;;  %p136_p4 = scmp.eq.s32.totalorder %s503_s20, 1 }
   0x9   : > { %s779_s24 = scalar_select %p117_p1, %s704_s17, %s119_s22  }
   0xa   : > { %p781_p5 = por %p130_p2, %p129_p0  ;;  %p785_p6 = por %p136_p4, %p135_p3 }
   0xb   : > { %p504_p7 = scmp.ge.s32.totalorder %s708_s18, 1  ;;  %p143_p8 = scmp.lt.s32.totalorder %s708_s18, 3 }
   0xc   : > { %s901_s25 = scalar_select %p781_p5, 1, 0 }
   0xd   : > { %s902_s26 = scalar_select %p785_p6, 1, 0 }
   0xe   : > { %p898_p9 = scmp.eq.s32.totalorder %s764_s19, 0  ;;  %p792_p10 = pnand %p504_p7, %p143_p8 }
   0xf   : > { %s710_s28 = smov [#allocation2]   ;;  %s614_s7 = scalar_lea.hbm %s895_s2, 256 }
  0x10   : > { %s903_s27 = scalar_select %p792_p10, 1, 0 }
  0x11   : > { %s155_s29 = sshll.u32 %s710_s28, 4  ;;  %p563_p11 = pneg %p792_p10  ;;  %s156_s29 = int_to_ptr.vmem [resolvable:$true] %s155_s29 }
  0x12   : > { %p615_p13 = scmp.ne.s32.totalorder %s895_s2, %s614_s7  ;;  %p621_p3 = scmp.lt.u32.totalorder %s614_s7, %s895_s2 }
  0x13   : > { %p800_p12 = pnand %p898_p9, %p563_p11 }
  0x15   : > { %p616_p0 = pneg %p800_p12 }
  0x17   : > { %p617_p1 = pnand %p616_p0, %p615_p13 }
  0x19   : > { %p618_p2 = pneg %p617_p1 }
  0x1b   : > { %p623_p4 = pnand %p621_p3, %p618_p2 }
  0x1d   : > { %626 = shalt.err (!%p623_p4)
}
  0x1e   : > { %s627_s12 = scalar_lea.vmem %s156_s29, 256  ;;  %p635_p9 = scmp.lt.s32.totalorder %s156_s29, %s156_s29 }
  0x1f   : > { %p628_p7 = scmp.ne.s32.totalorder %s156_s29, %s627_s12  ;;  %p636_p6 = scmp.lt.s32.totalorder %s627_s12, %s627_s12 }
  0x21   : > { %p630_p8 = pnand %p628_p7, %p616_p0  ;;  %p637_p5 = por %p636_p6, %p635_p9 }
  0x23   : > { %p631_p11 = pneg %p630_p8 }
  0x25   : > { %p638_p10 = pnand %p637_p5, %p631_p11 }
  0x27   : > { %641 = shalt.err (!%p638_p10)
}
  0x28   : > { %s711_s13 = smov 128   ;;  %s712_s14 = smov 8  }
  0x29   : > { %566 = dma.hbm_to_vmem [thread:$0]  (!%p800_p12), %s895_s2, 256, %s156_s29, [#allocation3], %s711_s13, %s711_s13, %s712_s14  }
  0x2a   : > { %p905_p13 = scmp.ne.s32.totalorder %s903_s27, 0 }
  0x2b   : > { %p906_p1 = scmp.eq.s32.totalorder (!%p905_p13), %s764_s19, 0 }
  0x2c   : > { %188 = sbr.rel (%p905_p13) target bundleno = 423 (0x1a7), region = 36 }
  0x33   : > { %687 = dma.done.wait (%p906_p1), [#allocation3], 256   ;;  %p907_p0 = pmov %p906_p1 }
  0x34   : > { %p217_p5 = scmp.lt.s32.totalorder %s764_s19, 1  ;;  %v713_v0 = vmov 0   ;;  %v714_v1 = vmov 0.0|0.0   ;;  %v249_v4 = vld [vmem:[#allocation2] sm:$0xff]  ;;  %v250_v5 = vld [vmem:[#allocation2 + $0x8] sm:$0xff]  ;;  %v325_v6 = vld [vmem:[%s896_s3] sm:$0xff]  ;;  %v235_v18 = vlaneseq }
  0x35   : > { %689 = vsyncadd (%p907_p0), [#allocation3], 4294967040  ;;  %613 = vset.pattern.permute.xlu0 %v713_v0  ;;  %548 = vmatprep.subr.bf16.mxu0 %v714_v1  ;;  %v326_v7 = vld [vmem:[%s896_s3 + $0x8] sm:$0xff]  ;;  %v549_v10 = vpack.c.bf16 %v250_v5, %v249_v4  ;;  %v327_v13 = vld [vmem:[%s896_s3 + $0x10] sm:$0xff]  ;;  %vm715_vm4 = vmmov 0   ;;  %v716_v16 = vmov 0.0  }
  0x36   : > { %s218_s23 = scalar_select %p217_p5, %s764_s19, 1  ;;  %551 = vmatprep.subr.bf16.mxu1 %v714_v1  ;;  %v552_v11 = vpack.c.bf16 %v326_v7, %v325_v6  ;;  %v328_v14 = vld [vmem:[%s896_s3 + $0x18] sm:$0xff]  ;;  %534 = vmatprep.mubr.msk.f32.mxu0 %vm715_vm4, %v716_v16  ;;  %v236_v19 = vand.u32 127, %v235_v18  ;;  %vm251_vm5 = vcmask 130048   ;;  %vm329_vm7 = vcmask 261120  }
  0x37   : > { %550 = vmatpush3.bf16.msra.mxu0 %v549_v10  ;;  %v555_v17 = vpack.c.bf16 %v328_v14, %v327_v13  ;;  %545 = vmatprep.mubr.msk.f32.mxu1 %vm715_vm4, %v716_v16  ;;  %s214_s22 = sand.u32 1, %s700_s16   ;;  %s521_s30 = sshll.u32 %s764_s19, 8 }
  0x38   : > { %s510_s28 = sshll.u32 %s218_s23, 3  ;;  %553 = vmatpush3.bf16.msra.mxu1 %v552_v11  ;;  %s509_s23 = sshll.u32 %s214_s22, 4 }
  0x39   : > { %s220_s27 = scalar_lea.vmem %s893_s0, %s510_s28  ;;  %s224_s7 = scalar_lea.vmem %s894_s1, %s510_s28  ;;  %554 = vmatprep.subr.bf16.mxu1 %v714_v1 }
  0x3a   : > { %v225_v2 = vld [vmem:[%s220_s27] sm:$0xff]  ;;  %s216_s28 = scalar_lea.vmem [#allocation5], %s509_s23  ;;  %s853_s6 = scalar_lea.hbm %s897_s4, %s521_s30 }
  0x3b   : > { %v230_v3 = vld [vmem:[%s224_s7] sm:$0xff]  ;;  %vm226_vm0 = vcmp.gt.s32.totalorder %v225_v2, 0  ;;  %s420_s29 = sshll.u32 %s216_s28, 4  ;;  %s406_s7 = scalar_lea.sflag [#allocation4], %s214_s22  ;;  %s848_s29 = int_to_ptr.vmem [resolvable:$true] %s420_s29 }
  0x3c   : > { %vm231_vm1 = vcmp.gt.s32.totalorder %v230_v3, 0  ;;  %v227_v8 = vsel %vm226_vm0, %v225_v2, 0  ;;  %556 = vmatpush3.bf16.msra.mxu1 %v555_v17  ;;  %s642_s8 = scalar_lea.vmem %s848_s29, 256  ;;  %p908_p9 = scmp.ne.s32.totalorder %s901_s25, 0 }
  0x3d   : > { %v232_v9 = vsel %vm231_vm1, %v230_v3, 0  ;;  %vm228_vm2 = vcmp.lt.s32.totalorder %v227_v8, 15  ;;  %p643_p6 = scmp.ne.s32.totalorder %s848_s29, %s642_s8  ;;  %s717_s19 = smov [#allocation5]  }
  0x3e   : > { %vm233_vm3 = vcmp.lt.s32.totalorder %v232_v9, 24  ;;  %v229_v12 = vsel %vm228_vm2, %v227_v8, 15  ;;  %s646_s9 = sshll.u32 %s717_s19, 4  ;;  %s647_s9 = int_to_ptr.vmem [resolvable:$false] %s646_s9 }
  0x3f   : > { %238 = vperm.xlu0 %613, %v229_v12   ;;  %v234_v15 = vsel %vm233_vm3, %v232_v9, 24  ;;  %p644_p10 = pnand %p643_p6, %p908_p9  ;;  %s648_s10 = scalar_lea.vmem %s647_s9, 512 }
  0x40   : > { %p649_p2 = scmp.lt.s32.totalorder %s848_s29, %s647_s9  ;;  %p650_p3 = scmp.lt.s32.totalorder %s648_s10, %s642_s8 }
  0x41   : > { %p645_p12 = pneg %p644_p10 }
  0x42   : > { %p651_p4 = por %p650_p3, %p649_p2 }
  0x43   : > { %244 = vperm.xlu0 %613, %v234_v15  }
  0x44   : > { %p652_p7 = pnand %p651_p4, %p645_p12 }
  0xbe   : > { %v239_v20 = vpop.permute.xlu0 %238 }
  0xbf   : > { %vm240_vm6 = vcmp.eq.s32.totalorder %v236_v19, %v239_v20 }
  0xc0   : > { %v512_v21 = vsel %vm240_vm6, 1.0, %v716_v16 }
  0xc1   : > { %535 = vmatmul.mubr.msk.f32.vlgmr.msra.gmra.mrb[0].mxu0 %vm251_vm5, %v512_v21 }
  0xc2   : > { %v245_v22 = vpop.permute.xlu0 %244 }
  0xc3   : > { %vm246_vm8 = vcmp.eq.s32.totalorder %v236_v19, %v245_v22 }
  0xc4   : > { %v513_v23 = vsel %vm246_vm8, 1.0, %v716_v16 }
  0xc5   : > { %546 = vmatmul.mubr.msk.f32.vlgmr.msra.gmra.mrb[0].mxu1 %vm329_vm7, %v513_v23 }
 0x194   : > { %v321_v24 = vpop.f32.mrb[0].mxu0 }
 0x195   : > { %403 = vst [vmem:[%s216_s28] sm:$0xff] %v321_v24  ;;  %v536_v25 = vpop.f32.mrb[1].mxu0 }
 0x198   : > { %v399_v26 = vpop.f32.mrb[0].mxu1 }
 0x199   : > { %404 = vst [vmem:[%s216_s28 + $0x8] sm:$0xff] %v399_v26  ;;  %v547_v27 = vpop.f32.mrb[1].mxu1 }
 0x19a   : > { %655 = shalt.err (!%p652_p7)
}
 0x19b   : > { %s656_s11 = scalar_lea.hbm %s853_s6, 256  ;;  %s660_s14 = scalar_lea.hbm %s897_s4, 512 }
 0x19c   : > { %p657_p8 = scmp.ne.s32.totalorder %s853_s6, %s656_s11  ;;  %p661_p1 = scmp.lt.u32.totalorder %s853_s6, %s897_s4 }
 0x19d   : > { %p662_p0 = scmp.lt.u32.totalorder %s660_s14, %s656_s11  ;;  %p664_p6 = scmp.lt.u32.totalorder %s656_s11, %s853_s6 }
 0x19e   : > { %p658_p11 = pnand %p657_p8, %p908_p9 }
 0x19f   : > { %p663_p5 = por %p662_p0, %p661_p1 }
 0x1a0   : > { %p659_p13 = pneg %p658_p11 }
 0x1a1   : > { %p665_p10 = por %p664_p6, %p663_p5 }
 0x1a3   : > { %p666_p12 = pnand %p665_p10, %p659_p13 }
 0x1a5   : > { %669 = shalt.err (!%p666_p12)
}
 0x1a6   : > { %561 = dma.vmem_to_hbm [thread:$0]  (%p908_p9), %s848_s29, 256, %s853_s6, %s406_s7  }
 0x1a7 PF: > { %p573_p2 = scmp.ge.s32.totalorder %s708_s18, 2  ;;  %s432_s23 = sand.u32 1, %s696_s15  }
 0x1a8   : > { %p909_p3 = scmp.ne.s32.totalorder %s902_s26, 0  ;;  %s433_s28 = scalar_lea.sflag [#allocation4], %s432_s23 }
 0x1aa   : > { %p568_p4 = pnand %p573_p2, %p909_p3 }
 0x1ac   : > { %691 = dma.done.wait (!%p568_p4), %s433_s28, 256  }
 0x1ad   : > { %693 = vsyncadd (!%p568_p4), %s433_s28, 4294967040  ;;  %p15_p7 = scmp.ge.s32.totalorder %s768_s21, 4   ;;  %s910_s15 = smov %s700_s16 }
 0x1ae   : > { %s911_s16 = smov %s704_s17  ;;  %s912_s17 = smov %s779_s24 }
 0x1af   : > { %s913_s18 = smov %s768_s21  ;;  %17 = sbr.rel (!%p15_p7) target bundleno = 4 (0x4), region = 79 }
 0x1b6   :  { %438 = vsyncpa [#allocation3], 1 }
 0x1b7   :  { %440 = vsyncpa [#allocation3 + $0x1], 1 }
 0x1b8   :  { %441 = vsyncpa [#allocation4], 1 }
 0x1b9   :  { %443 = vsyncpa [#allocation4 + $0x1], 1 }

</bundles_post_ra>
